<compile_context>
chip_gen: v7x
topology: tpu7x:2x2x1
jax: 0.10.0
libtpu: 0.0.40
codegen_flags: <defaults>
</compile_context>

<pallas_src>
import math
import functools

import jax
import jax.numpy as jnp
from jax.experimental import pallas as pl
from jax.experimental.pallas import tpu as pltpu


# --------------------------------------------------------------------------
# Kernel
# --------------------------------------------------------------------------
def _mha_kernel(q_ref, k_ref, v_ref,
                wq_ref, bq_ref, wk_ref, bk_ref, wv_ref, bv_ref,
                wo_ref, bo_ref, gamma_ref, beta_ref,
                o_ref,
                kp_ref, vp_ref, ctx_ref,
                *, num_heads: int, d_k: int, d_k_pad: int, eps: float,
                approx_softmax: bool):
    cd = kp_ref.dtype                      # compute (matmul-input) dtype
    qi = pl.program_id(1)

    # ---- K/V projections: once per batch element, reused across q tiles ----
    @pl.when(qi == 0)
    def _project_kv():
        k = k_ref[0].astype(cd)            # (Lk, D)
        v = v_ref[0].astype(cd)
        kp = jnp.dot(k, wk_ref[...], preferred_element_type=jnp.float32) + bk_ref[...]
        vp = jnp.dot(v, wv_ref[...], preferred_element_type=jnp.float32) + bv_ref[...]
        kp_ref[...] = kp.astype(cd)        # (Lk, H*d_k_pad), head-padded layout
        vp_ref[...] = vp.astype(cd)

    # ---- Q projection for this query tile ----------------------------------
    q = q_ref[0]                           # (TQ, D), input dtype (f32)
    qp = (jnp.dot(q.astype(cd), wq_ref[...], preferred_element_type=jnp.float32)
          + bq_ref[...]).astype(cd)        # (TQ, H*d_k_pad)

    scale = 1.0 / math.sqrt(d_k)
    nt_dims = (((1,), (1,)), ((), ()))     # contract last dim of both (K untransposed)

    # ---- per-head attention: lane-aligned slices, ctx into VMEM scratch ----
    for h in range(num_heads):
        lo = h * d_k_pad
        hi = lo + d_k_pad
        qh = qp[:, lo:hi]                  # (TQ, d_k_pad)   lane-aligned static slice
        kh = kp_ref[:, lo:hi]              # (Lk, d_k_pad)
        scores = jax.lax.dot_general(
            qh, kh, nt_dims, preferred_element_type=jnp.float32) * scale  # (TQ, Lk)

        # softmax over keys (f32)
        m = jnp.max(scores, axis=-1, keepdims=True)
        e = jnp.exp(scores - m)
        s = jnp.sum(e, axis=-1, keepdims=True)
        if approx_softmax:
            attn = e * pl.reciprocal(s, approx=True)   # EUP slot, off the VPU
        else:
            attn = e / s
        # (dropout == identity in eval mode)

        ctx_h = jnp.dot(attn.astype(cd), vp_ref[:, lo:hi],
                        preferred_element_type=jnp.float32)               # (TQ, d_k_pad)
        ctx_ref[:, lo:hi] = ctx_h.astype(cd)

    # ---- output projection + residual + LayerNorm (all f32) ----------------
    out = jnp.dot(ctx_ref[...], wo_ref[...],
                  preferred_element_type=jnp.float32) + bo_ref[...]        # (TQ, D)
    out = out + q.astype(jnp.float32)

    mean = jnp.mean(out, axis=-1, keepdims=True)
    cen = out - mean
    var = jnp.mean(cen * cen, axis=-1, keepdims=True)
    y = cen * jax.lax.rsqrt(var + eps) * gamma_ref[...] + beta_ref[...]

    o_ref[0] = y.astype(o_ref.dtype)


# --------------------------------------------------------------------------
# Wrapper helpers
# --------------------------------------------------------------------------
def _pick_q_tile(Lq: int, requested=None) -> int:
    if requested is not None:
        assert Lq % requested == 0
        return requested
    if Lq <= 256:
        return Lq                           # full dim -> always a legal block
    for t in range(256, 7, -8):             # largest multiple of 8 dividing Lq
        if Lq % t == 0:
            return t
    return Lq                               # fallback: single tile


def _pack_qkv_weight(w, b, num_heads, d_k, d_k_pad):
    """nn.Linear weight (D_out,D_in) / bias (D_out,) -> head-padded
    (D_in, H*d_k_pad) and (1, H*d_k_pad) so x @ W_p == x @ W.T placed on
    128-lane-aligned per-head blocks (zero padding)."""
    d_out, d_in = w.shape
    pad = d_k_pad - d_k
    wt = w.T.reshape(d_in, num_heads, d_k)
    wt = jnp.pad(wt, ((0, 0), (0, 0), (0, pad)))
    bt = jnp.pad(b.reshape(num_heads, d_k), ((0, 0), (0, pad)))
    return (wt.reshape(d_in, num_heads * d_k_pad),
            bt.reshape(1, num_heads * d_k_pad))


def _pack_out_weight(w, num_heads, d_k, d_k_pad):
    """nn.Linear w_o (D_out, D_in=H*d_k) -> head-padded (H*d_k_pad, D_out)."""
    d_out, d_in = w.shape
    pad = d_k_pad - d_k
    wt = w.T.reshape(num_heads, d_k, d_out)
    wt = jnp.pad(wt, ((0, 0), (0, pad), (0, 0)))
    return wt.reshape(num_heads * d_k_pad, d_out)


# --------------------------------------------------------------------------
# Public entry point
# --------------------------------------------------------------------------
def multi_head_attention(query, key, value, params, *, num_heads: int,
                         eps: float = 1e-5, compute_dtype=jnp.bfloat16,
                         q_tile=None):
    """query: [B,Lq,D], key/value: [B,Lk,D].  Matches the PyTorch module
    (mask=None, dropout in eval mode)."""
    B, Lq, D = query.shape
    Bk, Lk, Dk = key.shape
    assert value.shape == (Bk, Lk, Dk) and Bk == B and Dk == D
    assert D % num_heads == 0
    d_k = D // num_heads
    d_k_pad = ((d_k + 127) // 128) * 128     # 128-lane-aligned head blocks
    Dp = num_heads * d_k_pad

    TQ = _pick_q_tile(Lq, q_tile)
    n_q = Lq // TQ

    cd = jnp.dtype(compute_dtype)
    approx = cd != jnp.dtype(jnp.float32)    # approx reciprocal only on fast path

    # ---- weight packing (plain JAX, one-time, outside the kernel) ----------
    wq_p, bq_p = _pack_qkv_weight(params["w_q"], params["b_q"], num_heads, d_k, d_k_pad)
    wk_p, bk_p = _pack_qkv_weight(params["w_k"], params["b_k"], num_heads, d_k, d_k_pad)
    wv_p, bv_p = _pack_qkv_weight(params["w_v"], params["b_v"], num_heads, d_k, d_k_pad)
    wo_p = _pack_out_weight(params["w_o"], num_heads, d_k, d_k_pad)

    wq_p = wq_p.astype(cd); wk_p = wk_p.astype(cd)
    wv_p = wv_p.astype(cd); wo_p = wo_p.astype(cd)
    bq_p = bq_p.astype(jnp.float32); bk_p = bk_p.astype(jnp.float32)
    bv_p = bv_p.astype(jnp.float32)
    bo = params["b_o"].reshape(1, D).astype(jnp.float32)
    gamma = params["ln_gamma"].reshape(1, D).astype(jnp.float32)
    beta = params["ln_beta"].reshape(1, D).astype(jnp.float32)

    # ---- VMEM budget (double-buffered blocks + weights + scratch) ----------
    in_b = query.dtype.itemsize
    cd_b = cd.itemsize
    vmem_est = (
        2 * (2 * TQ * D + 2 * Lk * D) * in_b          # q/out + k/v blocks, x2 buffers
        + 2 * 4 * D * Dp * cd_b                        # 4 weight mats, x2 buffers
        + 2 * (3 * Dp + 3 * D) * 4                     # biases / gamma / beta
        + (2 * Lk * Dp + TQ * Dp) * cd_b               # K/V/ctx scratch
        + 6 * TQ * max(Lk, 128) * 4                    # softmax temporaries
        + (TQ * Dp + TQ * D) * 4                       # Q projection / out temporaries
    )
    # TODO(synk): re-derive per generation (v7x: 64 MiB physical VMEM).
    vmem_limit = int(min(max(2 * vmem_est, 32 * 1024 * 1024), 64 * 1024 * 1024))

    cost = pl.CostEstimate(
        flops=int(2 * B * (Lq * D * Dp + 2 * Lk * D * Dp
                           + 2 * num_heads * Lq * Lk * d_k_pad + Lq * Dp * D)),
        transcendentals=int(B * num_heads * Lq * Lk),
        bytes_accessed=int(in_b * B * (2 * Lq * D + 2 * Lk * D)
                           + cd_b * 4 * D * Dp),
    )

    kernel = functools.partial(
        _mha_kernel, num_heads=num_heads, d_k=d_k, d_k_pad=d_k_pad,
        eps=eps, approx_softmax=approx)

    const2 = lambda b, qi: (0, 0)
    in_specs = [
        pl.BlockSpec((1, TQ, D), lambda b, qi: (b, qi, 0)),   # query tile
        pl.BlockSpec((1, Lk, D), lambda b, qi: (b, 0, 0)),    # key   (full length)
        pl.BlockSpec((1, Lk, D), lambda b, qi: (b, 0, 0)),    # value (full length)
        pl.BlockSpec((D, Dp), const2), pl.BlockSpec((1, Dp), const2),   # Wq, bq
        pl.BlockSpec((D, Dp), const2), pl.BlockSpec((1, Dp), const2),   # Wk, bk
        pl.BlockSpec((D, Dp), const2), pl.BlockSpec((1, Dp), const2),   # Wv, bv
        pl.BlockSpec((Dp, D), const2), pl.BlockSpec((1, D), const2),    # Wo, bo
        pl.BlockSpec((1, D), const2), pl.BlockSpec((1, D), const2),     # gamma, beta
    ]

    return pl.pallas_call(
        kernel,
        out_shape=jax.ShapeDtypeStruct((B, Lq, D), query.dtype),
        grid_spec=pltpu.PrefetchScalarGridSpec(
            num_scalar_prefetch=0,
            grid=(B, n_q),
            in_specs=in_specs,
            out_specs=pl.BlockSpec((1, TQ, D), lambda b, qi: (b, qi, 0)),
            scratch_shapes=[
                pltpu.VMEM((Lk, Dp), cd),    # projected K (head-padded layout)
                pltpu.VMEM((Lk, Dp), cd),    # projected V
                pltpu.VMEM((TQ, Dp), cd),    # per-head context accumulator
            ]),
        compiler_params=pltpu.CompilerParams(
            dimension_semantics=("parallel", "arbitrary"),
            vmem_limit_bytes=vmem_limit),
        cost_estimate=cost,
    )(query, key, value,
      wq_p, bq_p, wk_p, bk_p, wv_p, bv_p, wo_p, bo, gamma, beta)


# --------------------------------------------------------------------------
# Pure-JAX reference (matches the PyTorch forward, dropout = identity)
# --------------------------------------------------------------------------
def _reference_mha(query, key, value, params, *, num_heads: int, eps: float = 1e-5):
    B, Lq, D = query.shape
    _, Lk, _ = key.shape
    d_k = D // num_heads

    def lin(x, w, b):
        return x @ w.T + b

    Q = lin(query, params["w_q"], params["b_q"]).reshape(B, Lq, num_heads, d_k).transpose(0, 2, 1, 3)
    K = lin(key, params["w_k"], params["b_k"]).reshape(B, Lk, num_heads, d_k).transpose(0, 2, 1, 3)
    V = lin(value, params["w_v"], params["b_v"]).reshape(B, Lk, num_heads, d_k).transpose(0, 2, 1, 3)

    scores = jnp.einsum("bhqd,bhkd->bhqk", Q, K) / math.sqrt(d_k)
    attn = jax.nn.softmax(scores, axis=-1)
    ctx = jnp.einsum("bhqk,bhkd->bhqd", attn, V).transpose(0, 2, 1, 3).reshape(B, Lq, D)
    out = lin(ctx, params["w_o"], params["b_o"]) + query

    mean = out.mean(-1, keepdims=True)
    var = ((out - mean) ** 2).mean(-1, keepdims=True)
    return (out - mean) / jnp.sqrt(var + eps) * params["ln_gamma"] + params["ln_beta"]


# --------------------------------------------------------------------------
# Self-test
# --------------------------------------------------------------------------
if __name__ == "__main__":
    B, Lq, Lk = 2, 8, 8
    d_model, num_heads = 32, 4

    key0 = jax.random.PRNGKey(0)
    keys = jax.random.split(key0, 12)

    s = 1.0 / math.sqrt(d_model)
    params = {
        "w_q": jax.random.uniform(keys[0], (d_model, d_model), jnp.float32, -s, s),
        "b_q": jax.random.uniform(keys[1], (d_model,), jnp.float32, -s, s),
        "w_k": jax.random.uniform(keys[2], (d_model, d_model), jnp.float32, -s, s),
        "b_k": jax.random.uniform(keys[3], (d_model,), jnp.float32, -s, s),
        "w_v": jax.random.uniform(keys[4], (d_model, d_model), jnp.float32, -s, s),
        "b_v": jax.random.uniform(keys[5], (d_model,), jnp.float32, -s, s),
        "w_o": jax.random.uniform(keys[6], (d_model, d_model), jnp.float32, -s, s),
        "b_o": jax.random.uniform(keys[7], (d_model,), jnp.float32, -s, s),
        "ln_gamma": jnp.ones((d_model,), jnp.float32),
        "ln_beta": jnp.zeros((d_model,), jnp.float32),
    }

    query = jax.random.normal(keys[8], (B, Lq, d_model), jnp.float32)
    key_in = jax.random.normal(keys[9], (B, Lk, d_model), jnp.float32)
    value = jax.random.normal(keys[10], (B, Lk, d_model), jnp.float32)

    ref = _reference_mha(query, key_in, value, params, num_heads=num_heads)

    # Strict path: f32 matmul inputs must match the PyTorch-equivalent reference.
    out_f32 = multi_head_attention(query, key_in, value, params,
                                   num_heads=num_heads, compute_dtype=jnp.float32)
    out_f32 = jax.block_until_ready(out_f32)
    assert out_f32.shape == (B, Lq, d_model)
    assert jnp.allclose(out_f32, ref, atol=1e-4, rtol=1e-4), "f32 mismatch vs reference"

    # Fast path: bf16 matmul inputs, f32 accumulation / softmax / LayerNorm.
    out_bf16 = multi_head_attention(query, key_in, value, params,
                                    num_heads=num_heads, compute_dtype=jnp.bfloat16)
    out_bf16 = jax.block_until_ready(out_bf16)
    assert out_bf16.shape == (B, Lq, d_model)
    assert jnp.allclose(out_bf16, ref, atol=1e-1, rtol=1e-1), "bf16 path diverged"

    print("KERNEL_OK")
</pallas_src>

<mosaic_0001>
module attributes {stable_mosaic.version = 11 : i64} {
  func.func @_mha_kernel(%arg0: i32, %arg1: i32, %arg2: memref<1x8x32xf32, #tpu.memory_space<vmem>>, %arg3: memref<1x8x32xf32, #tpu.memory_space<vmem>>, %arg4: memref<1x8x32xf32, #tpu.memory_space<vmem>>, %arg5: memref<32x512xf32, #tpu.memory_space<vmem>>, %arg6: memref<1x512xf32, #tpu.memory_space<vmem>>, %arg7: memref<32x512xf32, #tpu.memory_space<vmem>>, %arg8: memref<1x512xf32, #tpu.memory_space<vmem>>, %arg9: memref<32x512xf32, #tpu.memory_space<vmem>>, %arg10: memref<1x512xf32, #tpu.memory_space<vmem>>, %arg11: memref<512x32xf32, #tpu.memory_space<vmem>>, %arg12: memref<1x32xf32, #tpu.memory_space<vmem>>, %arg13: memref<1x32xf32, #tpu.memory_space<vmem>>, %arg14: memref<1x32xf32, #tpu.memory_space<vmem>>, %arg15: memref<1x8x32xf32, #tpu.memory_space<vmem>>, %arg16: memref<8x512xf32, #tpu.memory_space<vmem>>, %arg17: memref<8x512xf32, #tpu.memory_space<vmem>>, %arg18: memref<8x512xf32, #tpu.memory_space<vmem>>) attributes {dimension_semantics = [#tpu.dimension_semantics<parallel>, #tpu.dimension_semantics<arbitrary>], iteration_bounds = array<i64: 2, 1>, scalar_prefetch = 0 : i64, scratch_operands = 3 : i64, tpu.core_type = #tpu.core_type<tc>, window_params = [{transform_indices = @transform_0, window_bounds = array<i64: 1, 8, 32>}, {transform_indices = @transform_1, window_bounds = array<i64: 1, 8, 32>}, {transform_indices = @transform_2, window_bounds = array<i64: 1, 8, 32>}, {pipeline_mode = #tpu.pipeline_mode<synchronous>, transform_indices = @transform_3, window_bounds = array<i64: 32, 512>}, {pipeline_mode = #tpu.pipeline_mode<synchronous>, transform_indices = @transform_4, window_bounds = array<i64: 1, 512>}, {pipeline_mode = #tpu.pipeline_mode<synchronous>, transform_indices = @transform_5, window_bounds = array<i64: 32, 512>}, {pipeline_mode = #tpu.pipeline_mode<synchronous>, transform_indices = @transform_6, window_bounds = array<i64: 1, 512>}, {pipeline_mode = #tpu.pipeline_mode<synchronous>, transform_indices = @transform_7, window_bounds = array<i64: 32, 512>}, {pipeline_mode = #tpu.pipeline_mode<synchronous>, transform_indices = @transform_8, window_bounds = array<i64: 1, 512>}, {pipeline_mode = #tpu.pipeline_mode<synchronous>, transform_indices = @transform_9, window_bounds = array<i64: 512, 32>}, {pipeline_mode = #tpu.pipeline_mode<synchronous>, transform_indices = @transform_10, window_bounds = array<i64: 1, 32>}, {pipeline_mode = #tpu.pipeline_mode<synchronous>, transform_indices = @transform_11, window_bounds = array<i64: 1, 32>}, {pipeline_mode = #tpu.pipeline_mode<synchronous>, transform_indices = @transform_12, window_bounds = array<i64: 1, 32>}, {transform_indices = @transform_13, window_bounds = array<i64: 1, 8, 32>}]} {
    %c0_i32 = arith.constant 0 : i32
    %0 = arith.cmpi eq, %arg1, %c0_i32 : i32
    %1 = arith.extui %0 : i1 to i32
    %c0_i32_0 = arith.constant 0 : i32
    %2 = arith.cmpi ne, %1, %c0_i32_0 : i32
    scf.if %2 {
      %c0_67 = arith.constant 0 : index
      %c0_68 = arith.constant 0 : index
      %c0_69 = arith.constant 0 : index
      %110 = vector.load %arg3[%c0_67, %c0_68, %c0_69] : memref<1x8x32xf32, #tpu.memory_space<vmem>>, vector<1x8x32xf32>
      %111 = vector.shape_cast %110 : vector<1x8x32xf32> to vector<8x32xf32>
      %c0_70 = arith.constant 0 : index
      %c0_71 = arith.constant 0 : index
      %c0_72 = arith.constant 0 : index
      %112 = vector.load %arg4[%c0_70, %c0_71, %c0_72] : memref<1x8x32xf32, #tpu.memory_space<vmem>>, vector<1x8x32xf32>
      %113 = vector.shape_cast %112 : vector<1x8x32xf32> to vector<8x32xf32>
      %c0_73 = arith.constant 0 : index
      %c0_74 = arith.constant 0 : index
      %114 = vector.load %arg7[%c0_73, %c0_74] : memref<32x512xf32, #tpu.memory_space<vmem>>, vector<32x512xf32>
      %cst_75 = arith.constant dense<0.000000e+00> : vector<8x512xf32>
      %115 = tpu.matmul %111, %114, %cst_75 {dimension_numbers = #tpu.dot_dimension_numbers<[1], [0], [0], [1], [0, 0, 1, 1], [], []>} : vector<8x32xf32>, vector<32x512xf32>, vector<8x512xf32> -> vector<8x512xf32>
      %c0_76 = arith.constant 0 : index
      %c0_77 = arith.constant 0 : index
      %116 = vector.load %arg8[%c0_76, %c0_77] : memref<1x512xf32, #tpu.memory_space<vmem>>, vector<1x512xf32>
      %117 = vector.broadcast %116 : vector<1x512xf32> to vector<8x512xf32>
      %118 = arith.addf %115, %117 : vector<8x512xf32>
      %c0_78 = arith.constant 0 : index
      %c0_79 = arith.constant 0 : index
      %119 = vector.load %arg9[%c0_78, %c0_79] : memref<32x512xf32, #tpu.memory_space<vmem>>, vector<32x512xf32>
      %cst_80 = arith.constant dense<0.000000e+00> : vector<8x512xf32>
      %120 = tpu.matmul %113, %119, %cst_80 {dimension_numbers = #tpu.dot_dimension_numbers<[1], [0], [0], [1], [0, 0, 1, 1], [], []>} : vector<8x32xf32>, vector<32x512xf32>, vector<8x512xf32> -> vector<8x512xf32>
      %c0_81 = arith.constant 0 : index
      %c0_82 = arith.constant 0 : index
      %121 = vector.load %arg10[%c0_81, %c0_82] : memref<1x512xf32, #tpu.memory_space<vmem>>, vector<1x512xf32>
      %122 = vector.broadcast %121 : vector<1x512xf32> to vector<8x512xf32>
      %123 = arith.addf %120, %122 : vector<8x512xf32>
      %c0_83 = arith.constant 0 : index
      %c0_84 = arith.constant 0 : index
      %124 = vector.load %arg16[%c0_83, %c0_84] : memref<8x512xf32, #tpu.memory_space<vmem>>, vector<8x512xf32>
      tpu.vector_store %arg16[%c0_83, %c0_84], %118 {strides = array<i32>} : memref<8x512xf32, #tpu.memory_space<vmem>>, vector<8x512xf32>,
      %c0_85 = arith.constant 0 : index
      %c0_86 = arith.constant 0 : index
      %125 = vector.load %arg17[%c0_85, %c0_86] : memref<8x512xf32, #tpu.memory_space<vmem>>, vector<8x512xf32>
      tpu.vector_store %arg17[%c0_85, %c0_86], %123 {strides = array<i32>} : memref<8x512xf32, #tpu.memory_space<vmem>>, vector<8x512xf32>,
    } else {
    }
    %c0 = arith.constant 0 : index
    %c0_1 = arith.constant 0 : index
    %c0_2 = arith.constant 0 : index
    %3 = vector.load %arg2[%c0, %c0_1, %c0_2] : memref<1x8x32xf32, #tpu.memory_space<vmem>>, vector<1x8x32xf32>
    %4 = vector.shape_cast %3 : vector<1x8x32xf32> to vector<8x32xf32>
    %c0_3 = arith.constant 0 : index
    %c0_4 = arith.constant 0 : index
    %5 = vector.load %arg5[%c0_3, %c0_4] : memref<32x512xf32, #tpu.memory_space<vmem>>, vector<32x512xf32>
    %cst = arith.constant dense<0.000000e+00> : vector<8x512xf32>
    %6 = tpu.matmul %4, %5, %cst {dimension_numbers = #tpu.dot_dimension_numbers<[1], [0], [0], [1], [0, 0, 1, 1], [], []>} : vector<8x32xf32>, vector<32x512xf32>, vector<8x512xf32> -> vector<8x512xf32>
    %c0_5 = arith.constant 0 : index
    %c0_6 = arith.constant 0 : index
    %7 = vector.load %arg6[%c0_5, %c0_6] : memref<1x512xf32, #tpu.memory_space<vmem>>, vector<1x512xf32>
    %8 = vector.broadcast %7 : vector<1x512xf32> to vector<8x512xf32>
    %9 = arith.addf %6, %8 : vector<8x512xf32>
    %10 = vector.extract_strided_slice %9 {offsets = [0, 0], sizes = [8, 128], strides = [1, 1]} : vector<8x512xf32> to vector<8x128xf32>
    %c0_7 = arith.constant 0 : index
    %c0_8 = arith.constant 0 : index
    %11 = vector.load %arg16[%c0_7, %c0_8] : memref<8x512xf32, #tpu.memory_space<vmem>>, vector<8x128xf32>
    %cst_9 = arith.constant dense<0.000000e+00> : vector<8x8xf32>
    %12 = tpu.matmul %10, %11, %cst_9 {dimension_numbers = #tpu.dot_dimension_numbers<[1], [1], [0], [0], [0, 0, 1, 0], [], []>} : vector<8x128xf32>, vector<8x128xf32>, vector<8x8xf32> -> vector<8x8xf32>
    %cst_10 = arith.constant 0.353553385 : f32
    %13 = vector.broadcast %cst_10 : f32 to vector<8x8xf32>
    %14 = arith.mulf %12, %13 : vector<8x8xf32>
    %cst_11 = arith.constant dense<0xFF800000> : vector<8xf32>
    %15 = vector.multi_reduction <maximumf>, %14, %cst_11 [1] : vector<8x8xf32> to vector<8xf32>
    %16 = vector.shape_cast %15 : vector<8xf32> to vector<8x1xf32>
    %17 = vector.broadcast %16 : vector<8x1xf32> to vector<8x8xf32>
    %18 = arith.subf %14, %17 : vector<8x8xf32>
    %19 = math.exp %18 : vector<8x8xf32>
    %cst_12 = arith.constant dense<0.000000e+00> : vector<8xf32>
    %20 = vector.multi_reduction <add>, %19, %cst_12 [1] : vector<8x8xf32> to vector<8xf32>
    %21 = vector.shape_cast %20 : vector<8xf32> to vector<8x1xf32>
    %22 = vector.broadcast %21 : vector<8x1xf32> to vector<8x8xf32>
    %23 = arith.divf %19, %22 : vector<8x8xf32>
    %c0_13 = arith.constant 0 : index
    %c0_14 = arith.constant 0 : index
    %24 = vector.load %arg17[%c0_13, %c0_14] : memref<8x512xf32, #tpu.memory_space<vmem>>, vector<8x128xf32>
    %cst_15 = arith.constant dense<0.000000e+00> : vector<8x128xf32>
    %25 = tpu.matmul %23, %24, %cst_15 {dimension_numbers = #tpu.dot_dimension_numbers<[1], [0], [0], [1], [0, 0, 1, 1], [], []>} : vector<8x8xf32>, vector<8x128xf32>, vector<8x128xf32> -> vector<8x128xf32>
    %c0_16 = arith.constant 0 : index
    %c0_17 = arith.constant 0 : index
    %26 = vector.load %arg18[%c0_16, %c0_17] : memref<8x512xf32, #tpu.memory_space<vmem>>, vector<8x128xf32>
    tpu.vector_store %arg18[%c0_16, %c0_17], %25 {strides = array<i32>} : memref<8x512xf32, #tpu.memory_space<vmem>>, vector<8x128xf32>,
    %27 = vector.extract_strided_slice %9 {offsets = [0, 128], sizes = [8, 128], strides = [1, 1]} : vector<8x512xf32> to vector<8x128xf32>
    %c0_18 = arith.constant 0 : index
    %c128 = arith.constant 128 : index
    %28 = vector.load %arg16[%c0_18, %c128] : memref<8x512xf32, #tpu.memory_space<vmem>>, vector<8x128xf32>
    %cst_19 = arith.constant dense<0.000000e+00> : vector<8x8xf32>
    %29 = tpu.matmul %27, %28, %cst_19 {dimension_numbers = #tpu.dot_dimension_numbers<[1], [1], [0], [0], [0, 0, 1, 0], [], []>} : vector<8x128xf32>, vector<8x128xf32>, vector<8x8xf32> -> vector<8x8xf32>
    %cst_20 = arith.constant 0.353553385 : f32
    %30 = vector.broadcast %cst_20 : f32 to vector<8x8xf32>
    %31 = arith.mulf %29, %30 : vector<8x8xf32>
    %cst_21 = arith.constant dense<0xFF800000> : vector<8xf32>
    %32 = vector.multi_reduction <maximumf>, %31, %cst_21 [1] : vector<8x8xf32> to vector<8xf32>
    %33 = vector.shape_cast %32 : vector<8xf32> to vector<8x1xf32>
    %34 = vector.broadcast %33 : vector<8x1xf32> to vector<8x8xf32>
    %35 = arith.subf %31, %34 : vector<8x8xf32>
    %36 = math.exp %35 : vector<8x8xf32>
    %cst_22 = arith.constant dense<0.000000e+00> : vector<8xf32>
    %37 = vector.multi_reduction <add>, %36, %cst_22 [1] : vector<8x8xf32> to vector<8xf32>
    %38 = vector.shape_cast %37 : vector<8xf32> to vector<8x1xf32>
    %39 = vector.broadcast %38 : vector<8x1xf32> to vector<8x8xf32>
    %40 = arith.divf %36, %39 : vector<8x8xf32>
    %c0_23 = arith.constant 0 : index
    %c128_24 = arith.constant 128 : index
    %41 = vector.load %arg17[%c0_23, %c128_24] : memref<8x512xf32, #tpu.memory_space<vmem>>, vector<8x128xf32>
    %cst_25 = arith.constant dense<0.000000e+00> : vector<8x128xf32>
    %42 = tpu.matmul %40, %41, %cst_25 {dimension_numbers = #tpu.dot_dimension_numbers<[1], [0], [0], [1], [0, 0, 1, 1], [], []>} : vector<8x8xf32>, vector<8x128xf32>, vector<8x128xf32> -> vector<8x128xf32>
    %c0_26 = arith.constant 0 : index
    %c128_27 = arith.constant 128 : index
    %43 = vector.load %arg18[%c0_26, %c128_27] : memref<8x512xf32, #tpu.memory_space<vmem>>, vector<8x128xf32>
    tpu.vector_store %arg18[%c0_26, %c128_27], %42 {strides = array<i32>} : memref<8x512xf32, #tpu.memory_space<vmem>>, vector<8x128xf32>,
    %44 = vector.extract_strided_slice %9 {offsets = [0, 256], sizes = [8, 128], strides = [1, 1]} : vector<8x512xf32> to vector<8x128xf32>
    %c0_28 = arith.constant 0 : index
    %c256 = arith.constant 256 : index
    %45 = vector.load %arg16[%c0_28, %c256] : memref<8x512xf32, #tpu.memory_space<vmem>>, vector<8x128xf32>
    %cst_29 = arith.constant dense<0.000000e+00> : vector<8x8xf32>
    %46 = tpu.matmul %44, %45, %cst_29 {dimension_numbers = #tpu.dot_dimension_numbers<[1], [1], [0], [0], [0, 0, 1, 0], [], []>} : vector<8x128xf32>, vector<8x128xf32>, vector<8x8xf32> -> vector<8x8xf32>
    %cst_30 = arith.constant 0.353553385 : f32
    %47 = vector.broadcast %cst_30 : f32 to vector<8x8xf32>
    %48 = arith.mulf %46, %47 : vector<8x8xf32>
    %cst_31 = arith.constant dense<0xFF800000> : vector<8xf32>
    %49 = vector.multi_reduction <maximumf>, %48, %cst_31 [1] : vector<8x8xf32> to vector<8xf32>
    %50 = vector.shape_cast %49 : vector<8xf32> to vector<8x1xf32>
    %51 = vector.broadcast %50 : vector<8x1xf32> to vector<8x8xf32>
    %52 = arith.subf %48, %51 : vector<8x8xf32>
    %53 = math.exp %52 : vector<8x8xf32>
    %cst_32 = arith.constant dense<0.000000e+00> : vector<8xf32>
    %54 = vector.multi_reduction <add>, %53, %cst_32 [1] : vector<8x8xf32> to vector<8xf32>
    %55 = vector.shape_cast %54 : vector<8xf32> to vector<8x1xf32>
    %56 = vector.broadcast %55 : vector<8x1xf32> to vector<8x8xf32>
    %57 = arith.divf %53, %56 : vector<8x8xf32>
    %c0_33 = arith.constant 0 : index
    %c256_34 = arith.constant 256 : index
    %58 = vector.load %arg17[%c0_33, %c256_34] : memref<8x512xf32, #tpu.memory_space<vmem>>, vector<8x128xf32>
    %cst_35 = arith.constant dense<0.000000e+00> : vector<8x128xf32>
    %59 = tpu.matmul %57, %58, %cst_35 {dimension_numbers = #tpu.dot_dimension_numbers<[1], [0], [0], [1], [0, 0, 1, 1], [], []>} : vector<8x8xf32>, vector<8x128xf32>, vector<8x128xf32> -> vector<8x128xf32>
    %c0_36 = arith.constant 0 : index
    %c256_37 = arith.constant 256 : index
    %60 = vector.load %arg18[%c0_36, %c256_37] : memref<8x512xf32, #tpu.memory_space<vmem>>, vector<8x128xf32>
    tpu.vector_store %arg18[%c0_36, %c256_37], %59 {strides = array<i32>} : memref<8x512xf32, #tpu.memory_space<vmem>>, vector<8x128xf32>,
    %61 = vector.extract_strided_slice %9 {offsets = [0, 384], sizes = [8, 128], strides = [1, 1]} : vector<8x512xf32> to vector<8x128xf32>
    %c0_38 = arith.constant 0 : index
    %c384 = arith.constant 384 : index
    %62 = vector.load %arg16[%c0_38, %c384] : memref<8x512xf32, #tpu.memory_space<vmem>>, vector<8x128xf32>
    %cst_39 = arith.constant dense<0.000000e+00> : vector<8x8xf32>
    %63 = tpu.matmul %61, %62, %cst_39 {dimension_numbers = #tpu.dot_dimension_numbers<[1], [1], [0], [0], [0, 0, 1, 0], [], []>} : vector<8x128xf32>, vector<8x128xf32>, vector<8x8xf32> -> vector<8x8xf32>
    %cst_40 = arith.constant 0.353553385 : f32
    %64 = vector.broadcast %cst_40 : f32 to vector<8x8xf32>
    %65 = arith.mulf %63, %64 : vector<8x8xf32>
    %cst_41 = arith.constant dense<0xFF800000> : vector<8xf32>
    %66 = vector.multi_reduction <maximumf>, %65, %cst_41 [1] : vector<8x8xf32> to vector<8xf32>
    %67 = vector.shape_cast %66 : vector<8xf32> to vector<8x1xf32>
    %68 = vector.broadcast %67 : vector<8x1xf32> to vector<8x8xf32>
    %69 = arith.subf %65, %68 : vector<8x8xf32>
    %70 = math.exp %69 : vector<8x8xf32>
    %cst_42 = arith.constant dense<0.000000e+00> : vector<8xf32>
    %71 = vector.multi_reduction <add>, %70, %cst_42 [1] : vector<8x8xf32> to vector<8xf32>
    %72 = vector.shape_cast %71 : vector<8xf32> to vector<8x1xf32>
    %73 = vector.broadcast %72 : vector<8x1xf32> to vector<8x8xf32>
    %74 = arith.divf %70, %73 : vector<8x8xf32>
    %c0_43 = arith.constant 0 : index
    %c384_44 = arith.constant 384 : index
    %75 = vector.load %arg17[%c0_43, %c384_44] : memref<8x512xf32, #tpu.memory_space<vmem>>, vector<8x128xf32>
    %cst_45 = arith.constant dense<0.000000e+00> : vector<8x128xf32>
    %76 = tpu.matmul %74, %75, %cst_45 {dimension_numbers = #tpu.dot_dimension_numbers<[1], [0], [0], [1], [0, 0, 1, 1], [], []>} : vector<8x8xf32>, vector<8x128xf32>, vector<8x128xf32> -> vector<8x128xf32>
    %c0_46 = arith.constant 0 : index
    %c384_47 = arith.constant 384 : index
    %77 = vector.load %arg18[%c0_46, %c384_47] : memref<8x512xf32, #tpu.memory_space<vmem>>, vector<8x128xf32>
    tpu.vector_store %arg18[%c0_46, %c384_47], %76 {strides = array<i32>} : memref<8x512xf32, #tpu.memory_space<vmem>>, vector<8x128xf32>,
    %c0_48 = arith.constant 0 : index
    %c0_49 = arith.constant 0 : index
    %78 = vector.load %arg18[%c0_48, %c0_49] : memref<8x512xf32, #tpu.memory_space<vmem>>, vector<8x512xf32>
    %c0_50 = arith.constant 0 : index
    %c0_51 = arith.constant 0 : index
    %79 = vector.load %arg11[%c0_50, %c0_51] : memref<512x32xf32, #tpu.memory_space<vmem>>, vector<512x32xf32>
    %cst_52 = arith.constant dense<0.000000e+00> : vector<8x32xf32>
    %80 = tpu.matmul %78, %79, %cst_52 {dimension_numbers = #tpu.dot_dimension_numbers<[1], [0], [0], [1], [0, 0, 1, 1], [], []>} : vector<8x512xf32>, vector<512x32xf32>, vector<8x32xf32> -> vector<8x32xf32>
    %c0_53 = arith.constant 0 : index
    %c0_54 = arith.constant 0 : index
    %81 = vector.load %arg12[%c0_53, %c0_54] : memref<1x32xf32, #tpu.memory_space<vmem>>, vector<1x32xf32>
    %82 = vector.broadcast %81 : vector<1x32xf32> to vector<8x32xf32>
    %83 = arith.addf %80, %82 : vector<8x32xf32>
    %84 = arith.addf %83, %4 : vector<8x32xf32>
    %cst_55 = arith.constant dense<0.000000e+00> : vector<8xf32>
    %85 = vector.multi_reduction <add>, %84, %cst_55 [1] : vector<8x32xf32> to vector<8xf32>
    %86 = vector.shape_cast %85 : vector<8xf32> to vector<8x1xf32>
    %cst_56 = arith.constant 3.200000e+01 : f32
    %87 = vector.broadcast %cst_56 : f32 to vector<8x1xf32>
    %88 = arith.divf %86, %87 : vector<8x1xf32>
    %89 = vector.broadcast %88 : vector<8x1xf32> to vector<8x32xf32>
    %90 = arith.subf %84, %89 : vector<8x32xf32>
    %91 = arith.mulf %90, %90 : vector<8x32xf32>
    %cst_57 = arith.constant dense<0.000000e+00> : vector<8xf32>
    %92 = vector.multi_reduction <add>, %91, %cst_57 [1] : vector<8x32xf32> to vector<8xf32>
    %93 = vector.shape_cast %92 : vector<8xf32> to vector<8x1xf32>
    %cst_58 = arith.constant 3.200000e+01 : f32
    %94 = vector.broadcast %cst_58 : f32 to vector<8x1xf32>
    %95 = arith.divf %93, %94 : vector<8x1xf32>
    %cst_59 = arith.constant 9.99999974E-6 : f32
    %96 = vector.broadcast %cst_59 : f32 to vector<8x1xf32>
    %97 = arith.addf %95, %96 : vector<8x1xf32>
    %98 = math.rsqrt %97 : vector<8x1xf32>
    %99 = vector.broadcast %98 : vector<8x1xf32> to vector<8x32xf32>
    %100 = arith.mulf %90, %99 : vector<8x32xf32>
    %c0_60 = arith.constant 0 : index
    %c0_61 = arith.constant 0 : index
    %101 = vector.load %arg13[%c0_60, %c0_61] : memref<1x32xf32, #tpu.memory_space<vmem>>, vector<1x32xf32>
    %102 = vector.broadcast %101 : vector<1x32xf32> to vector<8x32xf32>
    %103 = arith.mulf %100, %102 : vector<8x32xf32>
    %c0_62 = arith.constant 0 : index
    %c0_63 = arith.constant 0 : index
    %104 = vector.load %arg14[%c0_62, %c0_63] : memref<1x32xf32, #tpu.memory_space<vmem>>, vector<1x32xf32>
    %105 = vector.broadcast %104 : vector<1x32xf32> to vector<8x32xf32>
    %106 = arith.addf %103, %105 : vector<8x32xf32>
    %c0_64 = arith.constant 0 : index
    %c0_65 = arith.constant 0 : index
    %c0_66 = arith.constant 0 : index
    %107 = vector.load %arg15[%c0_64, %c0_65, %c0_66] : memref<1x8x32xf32, #tpu.memory_space<vmem>>, vector<1x8x32xf32>
    %108 = vector.shape_cast %107 : vector<1x8x32xf32> to vector<8x32xf32>
    %109 = vector.shape_cast %106 : vector<8x32xf32> to vector<1x8x32xf32>
    tpu.vector_store %arg15[%c0_64, %c0_65, %c0_66], %109 {strides = array<i32>} : memref<1x8x32xf32, #tpu.memory_space<vmem>>, vector<1x8x32xf32>,
    return
  }
  func.func @transform_0(%arg0: i32, %arg1: i32) -> (i32, i32, i32) {
    %c0_i32 = arith.constant 0 : i32
    %c0_i32_0 = arith.constant 0 : i32
    return %arg0, %arg1, %c0_i32 : i32, i32, i32
  }
  func.func @transform_1(%arg0: i32, %arg1: i32) -> (i32, i32, i32) {
    %c0_i32 = arith.constant 0 : i32
    %c0_i32_0 = arith.constant 0 : i32
    %c0_i32_1 = arith.constant 0 : i32
    return %arg0, %c0_i32, %c0_i32_0 : i32, i32, i32
  }
  func.func @transform_2(%arg0: i32, %arg1: i32) -> (i32, i32, i32) {
    %c0_i32 = arith.constant 0 : i32
    %c0_i32_0 = arith.constant 0 : i32
    %c0_i32_1 = arith.constant 0 : i32
    return %arg0, %c0_i32, %c0_i32_0 : i32, i32, i32
  }
  func.func @transform_3(%arg0: i32, %arg1: i32) -> (i32, i32) {
    %c0_i32 = arith.constant 0 : i32
    %c0_i32_0 = arith.constant 0 : i32
    %c0_i32_1 = arith.constant 0 : i32
    return %c0_i32, %c0_i32_0 : i32, i32
  }
  func.func @transform_4(%arg0: i32, %arg1: i32) -> (i32, i32) {
    %c0_i32 = arith.constant 0 : i32
    %c0_i32_0 = arith.constant 0 : i32
    %c0_i32_1 = arith.constant 0 : i32
    return %c0_i32, %c0_i32_0 : i32, i32
  }
  func.func @transform_5(%arg0: i32, %arg1: i32) -> (i32, i32) {
    %c0_i32 = arith.constant 0 : i32
    %c0_i32_0 = arith.constant 0 : i32
    %c0_i32_1 = arith.constant 0 : i32
    return %c0_i32, %c0_i32_0 : i32, i32
  }
  func.func @transform_6(%arg0: i32, %arg1: i32) -> (i32, i32) {
    %c0_i32 = arith.constant 0 : i32
    %c0_i32_0 = arith.constant 0 : i32
    %c0_i32_1 = arith.constant 0 : i32
    return %c0_i32, %c0_i32_0 : i32, i32
  }
  func.func @transform_7(%arg0: i32, %arg1: i32) -> (i32, i32) {
    %c0_i32 = arith.constant 0 : i32
    %c0_i32_0 = arith.constant 0 : i32
    %c0_i32_1 = arith.constant 0 : i32
    return %c0_i32, %c0_i32_0 : i32, i32
  }
  func.func @transform_8(%arg0: i32, %arg1: i32) -> (i32, i32) {
    %c0_i32 = arith.constant 0 : i32
    %c0_i32_0 = arith.constant 0 : i32
    %c0_i32_1 = arith.constant 0 : i32
    return %c0_i32, %c0_i32_0 : i32, i32
  }
  func.func @transform_9(%arg0: i32, %arg1: i32) -> (i32, i32) {
    %c0_i32 = arith.constant 0 : i32
    %c0_i32_0 = arith.constant 0 : i32
    %c0_i32_1 = arith.constant 0 : i32
    return %c0_i32, %c0_i32_0 : i32, i32
  }
  func.func @transform_10(%arg0: i32, %arg1: i32) -> (i32, i32) {
    %c0_i32 = arith.constant 0 : i32
    %c0_i32_0 = arith.constant 0 : i32
    %c0_i32_1 = arith.constant 0 : i32
    return %c0_i32, %c0_i32_0 : i32, i32
  }
  func.func @transform_11(%arg0: i32, %arg1: i32) -> (i32, i32) {
    %c0_i32 = arith.constant 0 : i32
    %c0_i32_0 = arith.constant 0 : i32
    %c0_i32_1 = arith.constant 0 : i32
    return %c0_i32, %c0_i32_0 : i32, i32
  }
  func.func @transform_12(%arg0: i32, %arg1: i32) -> (i32, i32) {
    %c0_i32 = arith.constant 0 : i32
    %c0_i32_0 = arith.constant 0 : i32
    %c0_i32_1 = arith.constant 0 : i32
    return %c0_i32, %c0_i32_0 : i32, i32
  }
  func.func @transform_13(%arg0: i32, %arg1: i32) -> (i32, i32, i32) {
    %c0_i32 = arith.constant 0 : i32
    %c0_i32_0 = arith.constant 0 : i32
    return %arg0, %arg1, %c0_i32 : i32, i32, i32
  }
}

</mosaic_0001>

<bundles_post_ra>
// kernel: tpu_custom_call.1
= control target key start
LH: loop header
LB: loop body
LE: loop exit
PB: predicated region body
PF: predicated region fallthrough
CT: control target
= control target key end

     0   :  { %18 = vsyncpa [#allocation6], 0  ;;  %s3101_s0 = inlined_call_operand.vmem [shape: f32[2,8,32], index: 0, kind: input, shape index: {}]   ;;  %s3102_s1 = inlined_call_operand.vmem [shape: f32[2,8,32], index: 1, kind: input, shape index: {}]   ;;  %s3103_s2 = inlined_call_operand.vmem [shape: f32[2,8,32], index: 2, kind: input, shape index: {}]   ;;  %s3104_s3 = inlined_call_operand.vmem [shape: f32[32,512], index: 3, kind: input, shape index: {}]   ;;  %s3105_s4 = inlined_call_operand.vmem [shape: f32[1,512], index: 4, kind: input, shape index: {}]   ;;  %s3106_s5 = inlined_call_operand.vmem [shape: f32[32,512], index: 5, kind: input, shape index: {}]   ;;  %s3107_s6 = inlined_call_operand.vmem [shape: f32[1,512], index: 6, kind: input, shape index: {}]   ;;  %s3108_s7 = inlined_call_operand.vmem [shape: f32[32,512], index: 7, kind: input, shape index: {}]   ;;  %s3109_s8 = inlined_call_operand.vmem [shape: f32[1,512], index: 8, kind: input, shape index: {}]   ;;  %s3110_s9 = inlined_call_operand.vmem [shape: f32[512,32], index: 9, kind: input, shape index: {}]   ;;  %s3111_s10 = inlined_call_operand.vmem [shape: f32[1,32], index: 10, kind: input, shape index: {}]   ;;  %s3112_s11 = inlined_call_operand.vmem [shape: f32[1,32], index: 11, kind: input, shape index: {}]   ;;  %s3113_s12 = inlined_call_operand.vmem [shape: f32[1,32], index: 12, kind: input, shape index: {}]   ;;  %s3114_s13 = inlined_call_operand.hbm [shape: f32[2,8,32], index: 13, kind: output, shape index: {}]  }
   0x1   :  { %20 = vsyncpa [#allocation6 + $0x1], 0  ;;  %s2543_s25 = smov 0   ;;  %s2545_s26 = smov 0  }
   0x2   :  { %s2547_s27 = smov 0   ;;  %s2549_s28 = smov 0  }
   0x3   :  { %s2551_s29 = smov 0   ;;  %s2553_s30 = smov 0  }
   0x4 LB: > { %3119 = sst [smem:[#allocation8_spill]] %s2456_s27  ;;  %s2051_s14 = sadd.s32 4294967295, %s2468_s30   ;;  %s2468_s30 = sphi %s2553_s30, %s26_s30   ;;  %s2464_s29 = sphi %s2551_s29, %s3130_s29   ;;  %s2460_s28 = sphi %s2549_s28, %s3129_s28   ;;  %s2456_s27 = sphi %s2547_s27, %s3128_s27   ;;  %s2452_s26 = sphi %s2545_s26, %s3132_s26   ;;  %s2448_s25 = sphi %s2543_s25, %s3131_s25  }
   0x5   : > { %3120 = sst [smem:[#allocation9_spill]] %s2464_s29  ;;  %s2052_s15 = sadd.s32 4294967294, %s2468_s30  }
   0x6   : > { %s38_s16 = sadd.s32 1, %s2464_s29  ;;  %s337_s17 = sadd.s32 1, %s2456_s27 }
   0x7   : > { %p40_p0 = scmp.ge.s32.totalorder %s38_s16, 2  ;;  %p347_p1 = scmp.ne.s32.totalorder %s2456_s27, %s2452_s26 }
   0x8   : > { %p348_p2 = scmp.eq.s32.totalorder %s2051_s14, 1  ;;  %p353_p3 = scmp.ne.s32.totalorder %s2452_s26, %s2448_s25 }
   0x9   : > { %s3134_s16 = smov (%p40_p0, %s38_s16), 0  ;;  %p354_p5 = scmp.eq.s32.totalorder %s2052_s15, 1 }
   0xa   : > { %3121 = sst [smem:[#allocation10_spill]] %s3134_s16  ;;  %p2583_p4 = por %p348_p2, %p347_p1 }
   0xb   : > { %s332_s19 = ssub.s32 %s2464_s29, %s3134_s16  ;;  %p2055_p6 = scmp.ge.s32.totalorder %s2468_s30, 1 }
   0xc   : > { %p335_p7 = scmp.eq.s32.totalorder %s332_s19, 0  ;;  %p2590_p8 = por %p354_p5, %p353_p3 }
   0xd   : > { %p426_p9 = scmp.lt.s32.totalorder %s2468_s30, 3 }
   0xe   : > { %s3123_s20 = scalar_select %p2590_p8, 1, 0 }
   0xf   : > { %s2596_s21 = scalar_select %p335_p7, %s2456_s27, %s337_s17  }
  0x10   : > { %3124 = sst [smem:[#allocation11_spill]] %s3123_s20  ;;  %p427_p10 = pnand %p2055_p6, %p426_p9 }
  0x11   : > { %3125 = sst [smem:[#allocation12_spill]] %s2596_s21  ;;  %v502_v0 = vld [vmem:[%s3106_s5 + $0x8] sm:$0xff] (!%p427_p10)  ;;  %v501_v2 = vld [vmem:[%s3106_s5] sm:$0xff] (!%p427_p10)  ;;  %p480_p11 = scmp.lt.s32.totalorder (!%p427_p10), %s2460_s28, 1  ;;  %v2470_v7 = vmov (!%p427_p10), 0.0   ;;  %v504_v12 = vld [vmem:[%s3106_s5 + $0x18] sm:$0xff] (!%p427_p10) }
  0x12   : > { %430 = sbr.rel (%p427_p10) target bundleno = 1559 (0x617), region = 72  ;;  %v506_v1 = vld [vmem:[%s3106_s5 + $0x28] sm:$0xff] (!%p427_p10)  ;;  %v505_v4 = vld [vmem:[%s3106_s5 + $0x20] sm:$0xff] (!%p427_p10)  ;;  %607 = vmatprep.mubr.f32.mxu0 (!%p427_p10), %v2470_v7  ;;  %678 = vmatprep.mubr.f32.mxu1 (!%p427_p10), %v2470_v7  ;;  %v508_v13 = vld [vmem:[%s3106_s5 + $0x38] sm:$0xff] (!%p427_p10)  ;;  %vm539_vm0 = vcmask (!%p427_p10), 261120   ;;  %vm2471_vm1 = vmmov (!%p427_p10), 0  }
  0x13   : > { %v2203_v3 = vpack.c.bf16 (!%p427_p10), %v506_v1, %v502_v0  ;;  %v510_v5 = vld [vmem:[%s3106_s5 + $0x48] sm:$0xff] (!%p427_p10)  ;;  %v2205_v8 = vpack.c.bf16 (!%p427_p10), %v505_v4, %v501_v2  ;;  %v509_v10 = vld [vmem:[%s3106_s5 + $0x40] sm:$0xff] (!%p427_p10)  ;;  %v503_v14 = vld [vmem:[%s3106_s5 + $0x10] sm:$0xff] (!%p427_p10)  ;;  %v2211_v17 = vpack.c.bf16 (!%p427_p10), %v508_v13, %v504_v12  ;;  %v519_v13 = vlaneseq (!%p427_p10)  ;;  %s477_s20 = sand.u32 (!%p427_p10), 1, %s2452_s26  }
  0x14   : > { %v514_v6 = vld [vmem:[%s3106_s5 + $0x68] sm:$0xff] (!%p427_p10)  ;;  %v513_v11 = vld [vmem:[%s3106_s5 + $0x60] sm:$0xff] (!%p427_p10)  ;;  %v507_v15 = vld [vmem:[%s3106_s5 + $0x30] sm:$0xff] (!%p427_p10)  ;;  %vm1133_vm2 = vcmask (!%p427_p10), 64512   ;;  %s2056_s14 = sshll.u32 (!%p427_p10), %s477_s20, 3  ;;  %s1942_s15 = scalar_lea.sflag (!%p427_p10), [#allocation6], %s477_s20 }
  0x15   : > { %v2207_v9 = vpack.c.bf16 (!%p427_p10), %v514_v6, %v510_v5  ;;  %2204 = vmatprep.subr.bf16.mxu0 (!%p427_p10), %v2203_v3  ;;  %v2209_v16 = vpack.c.bf16 (!%p427_p10), %v513_v11, %v509_v10  ;;  %v2213_v18 = vpack.c.bf16 (!%p427_p10), %v507_v15, %v503_v14  ;;  %v686_v19 = vld [vmem:[%s3108_s7 + $0x8] sm:$0xff] (!%p427_p10)  ;;  %v685_v21 = vld [vmem:[%s3108_s7] sm:$0xff] (!%p427_p10)  ;;  %v512_v24 = vld [vmem:[%s3106_s5 + $0x58] sm:$0xff] (!%p427_p10)  ;;  %2212 = vmatprep.subr.bf16.mxu1 (!%p427_p10), %v2211_v17  ;;  %v520_v14 = vshrl.u32 (!%p427_p10), %v519_v13, 7 }
  0x16   : > { %2206 = vmatpush1.bf16.msra.mxu0 (!%p427_p10), %v2205_v8  ;;  %v690_v20 = vld [vmem:[%s3108_s7 + $0x28] sm:$0xff] (!%p427_p10)  ;;  %v689_v23 = vld [vmem:[%s3108_s7 + $0x20] sm:$0xff] (!%p427_p10)  ;;  %v516_v25 = vld [vmem:[%s3106_s5 + $0x78] sm:$0xff] (!%p427_p10) }
  0x17   : > { %2208 = vmatprep.subr.bf16.mxu0 (!%p427_p10), %v2207_v9  ;;  %v2219_v22 = vpack.c.bf16 (!%p427_p10), %v690_v20, %v686_v19  ;;  %v2215_v26 = vpack.c.bf16 (!%p427_p10), %v516_v25, %v512_v24  ;;  %v511_v27 = vld [vmem:[%s3106_s5 + $0x50] sm:$0xff] (!%p427_p10)  ;;  %2214 = vmatpush1.bf16.msra.mxu1 (!%p427_p10), %v2213_v18  ;;  %v694_v31 = vld [vmem:[%s3108_s7 + $0x48] sm:$0xff] (!%p427_p10)  ;;  %v2221_v33 = vpack.c.bf16 (!%p427_p10), %v689_v23, %v685_v21  ;;  %v693_v34 = vld [vmem:[%s3108_s7 + $0x40] sm:$0xff] (!%p427_p10)  ;;  %v529_v18 = vsub.s32 (!%p427_p10), 2, %v520_v14 }
  0x18   : > { %v515_v28 = vld [vmem:[%s3106_s5 + $0x70] sm:$0xff] (!%p427_p10)  ;;  %v698_v32 = vld [vmem:[%s3108_s7 + $0x68] sm:$0xff] (!%p427_p10)  ;;  %v688_v35 = vld [vmem:[%s3108_s7 + $0x18] sm:$0xff] (!%p427_p10)  ;;  %v533_v20 = vsub.s32 (!%p427_p10), 3, %v520_v14 }
  0x19   : > { %s481_s19 = scalar_select %p480_p11, %s2460_s28, 1  ;;  %v2217_v30 = vpack.c.bf16 %v515_v28, %v511_v27  ;;  %2216 = vmatprep.subr.bf16.mxu1 %v2215_v26  ;;  %v692_v36 = vld [vmem:[%s3108_s7 + $0x38] sm:$0xff]  ;;  %v2223_v37 = vpack.c.bf16 %v698_v32, %v694_v31  ;;  %v697_v38 = vld [vmem:[%s3108_s7 + $0x60] sm:$0xff]  ;;  %v687_v40 = vld [vmem:[%s3108_s7 + $0x10] sm:$0xff] }
  0x1a   : > { %2210 = vmatpush1.bf16.msra.mxu0 %v2209_v16  ;;  %v2227_v39 = vpack.c.bf16 %v692_v36, %v688_v35  ;;  %v691_v41 = vld [vmem:[%s3108_s7 + $0x30] sm:$0xff]  ;;  %v878_v42 = vld [vmem:[%s3104_s3 + $0x8] sm:$0xff]  ;;  %v696_v45 = vld [vmem:[%s3108_s7 + $0x58] sm:$0xff]  ;;  %v2225_v47 = vpack.c.bf16 %v697_v38, %v693_v34  ;;  %v525_v16 = vsub.s32 1, %v520_v14 }
  0x1b   : > { %s2638_s16 = sshll.u32 %s481_s19, 3  ;;  %2220 = vmatprep.subr.bf16.mxu0 %v2219_v22  ;;  %v882_v43 = vld [vmem:[%s3104_s3 + $0x28] sm:$0xff]  ;;  %2218 = vmatpush1.bf16.msra.mxu1 %v2217_v30  ;;  %v2229_v44 = vpack.c.bf16 %v691_v41, %v687_v40  ;;  %v700_v46 = vld [vmem:[%s3108_s7 + $0x78] sm:$0xff]  ;;  %v695_v49 = vld [vmem:[%s3108_s7 + $0x50] sm:$0xff]  ;;  %v521_v22 = vsub.s32 0, %v520_v14 }
  0x1c   : > { %s490_s19 = scalar_lea.vmem %s3102_s1, %s2638_s16  ;;  %s494_s21 = scalar_lea.vmem %s3103_s2, %s2638_s16  ;;  %v2231_v48 = vpack.c.bf16 %v700_v46, %v696_v45  ;;  %v699_v50 = vld [vmem:[%s3108_s7 + $0x70] sm:$0xff]  ;;  %2228 = vmatprep.subr.bf16.mxu1 %v2227_v39  ;;  %v2235_v51 = vpack.c.bf16 %v882_v43, %v878_v42  ;;  %v877_v52 = vld [vmem:[%s3104_s3] sm:$0xff]  ;;  %v886_v54 = vld [vmem:[%s3104_s3 + $0x48] sm:$0xff] }
  0x1d   : > { %v499_v29 = vld [vmem:[%s490_s19] sm:$0xff]  ;;  %v890_v55 = vld [vmem:[%s3104_s3 + $0x68] sm:$0xff]  ;;  %v880_v56 = vld [vmem:[%s3104_s3 + $0x18] sm:$0xff]  ;;  %v2233_v59 = vpack.c.bf16 %v699_v50, %v695_v49  ;;  %s486_s19 = scalar_lea.vmem %s3101_s0, %s2638_s16 }
  0x1e   : > { %2060 = vmatmul.mubr.msk.f32.vlgmr.msra.gmra.mrb[0].mxu0 %vm539_vm0, %v499_v29  ;;  %v881_v53 = vld [vmem:[%s3104_s3 + $0x20] sm:$0xff]  ;;  %2061 = vmatmul.mubr.msk.f32.vlgmr.msra.gmra.mrb[0].mxu1 %vm539_vm0, %v499_v29  ;;  %v884_v57 = vld [vmem:[%s3104_s3 + $0x38] sm:$0xff]  ;;  %v879_v62 = vld [vmem:[%s3104_s3 + $0x10] sm:$0xff]  ;;  %v2239_v0 = vpack.c.bf16 %v890_v55, %v886_v54 }
  0x1f   : > { %2222 = vmatpush1.bf16.msra.mxu0 %v2221_v33  ;;  %790 = vmatprep.mubr.f32.mxu0 %v2470_v7  ;;  %v500_v58 = vld [vmem:[%s494_s21] sm:$0xff]  ;;  %v2237_v60 = vpack.c.bf16 %v881_v53, %v877_v52  ;;  %v883_v63 = vld [vmem:[%s3104_s3 + $0x30] sm:$0xff]  ;;  %v2243_v2 = vpack.c.bf16 %v884_v57, %v880_v56  ;;  %v888_v3 = vld [vmem:[%s3104_s3 + $0x58] sm:$0xff]  ;;  %s2074_s21 = sshll.u32 %s2460_s28, 7  ;;  %s2472_s28 = smov [#allocation5]  }
  0x20   : > { %2224 = vmatprep.subr.bf16.mxu0 %v2223_v37  ;;  %2230 = vmatpush1.bf16.msra.mxu1 %v2229_v44  ;;  %v885_v61 = vld [vmem:[%s3104_s3 + $0x40] sm:$0xff]  ;;  %v892_v4 = vld [vmem:[%s3104_s3 + $0x78] sm:$0xff]  ;;  %v2245_v5 = vpack.c.bf16 %v883_v63, %v879_v62  ;;  %v887_v9 = vld [vmem:[%s3104_s3 + $0x50] sm:$0xff]  ;;  %s3053_s24 = scalar_lea.hbm %s3114_s13, %s2074_s21 }
  0x21   : > { %861 = vmatprep.mubr.f32.mxu1 %v2470_v7  ;;  %2232 = vmatprep.subr.bf16.mxu1 %v2231_v48  ;;  %v889_v1 = vld [vmem:[%s3104_s3 + $0x60] sm:$0xff]  ;;  %v2247_v8 = vpack.c.bf16 %v892_v4, %v888_v3  ;;  %v891_v10 = vld [vmem:[%s3104_s3 + $0x70] sm:$0xff] }
  0x22   : > { %v2241_v6 = vpack.c.bf16 %v889_v1, %v885_v61  ;;  %v2249_v11 = vpack.c.bf16 %v891_v10, %v887_v9  ;;  %v2768_v12 = vld [vmem:[%s486_s19] sm:$0xff]  ;;  %s479_s19 = scalar_lea.vmem [#allocation5], %s2056_s14  ;;  %s2394_s14 = sshll.u32 %s2472_s28, 4  ;;  %s2395_s14 = int_to_ptr.vmem [resolvable:$false] %s2394_s14 }
  0x23   : > { %2226 = vmatpush1.bf16.msra.mxu0 %v2225_v47  ;;  %v701_v15 = vld [vmem:[%s3109_s8] sm:$0xf]  ;;  %s1956_s16 = sshll.u32 %s479_s19, 4  ;;  %s2396_s17 = scalar_lea.vmem %s2395_s14, 256  ;;  %s3055_s16 = int_to_ptr.vmem [resolvable:$true] %s1956_s16 }
  0x24   : > { %2236 = vmatprep.subr.bf16.mxu0 %v2235_v51  ;;  %2234 = vmatpush1.bf16.msra.mxu1 %v2233_v59  ;;  %v710_v17 = vrot.slane %v701_v15, %v525_v16  ;;  %v714_v19 = vrot.slane %v701_v15, %v529_v18  ;;  %v718_v21 = vrot.slane %v701_v15, %v533_v20  ;;  %v517_v23 = vld [vmem:[%s3107_s6] sm:$0xf]  ;;  %s2390_s29 = scalar_lea.vmem %s3055_s16, 128  ;;  %p2397_p1 = scmp.lt.s32.totalorder %s3055_s16, %s2395_s14 }
  0x25   : > { %2244 = vmatprep.subr.bf16.mxu1 %v2243_v2  ;;  %v522_v24 = vrot.slane %v517_v23, %v521_v22  ;;  %v706_v30 = vrot.slane %v701_v15, %v521_v22  ;;  %v893_v35 = vld [vmem:[%s3105_s4] sm:$0xf]  ;;  %v526_v41 = vrot.slane %v517_v23, %v525_v16  ;;  %v530_v47 = vrot.slane %v517_v23, %v529_v18  ;;  %p2391_p12 = scmp.ne.s32.totalorder %s3055_s16, %s2390_s29  ;;  %p2398_p2 = scmp.lt.s32.totalorder %s2396_s17, %s2390_s29 }
  0x26   : > { %2062 = vmatmul.mubr.msk.f32.vlgmr.msra.gmra.mrb[2].mxu0 %vm539_vm0, %v500_v58  ;;  %v898_v39 = vrot.slane %v893_v35, %v521_v22  ;;  %v902_v44 = vrot.slane %v893_v35, %v525_v16  ;;  %v906_v48 = vrot.slane %v893_v35, %v529_v18  ;;  %v534_v53 = vrot.slane %v517_v23, %v533_v20 }
  0x27   : > { %2238 = vmatpush1.bf16.msra.mxu0 %v2237_v60  ;;  %983 = vmatprep.mubr.f32.mxu0 %v2470_v7  ;;  %v910_v55 = vrot.slane %v893_v35, %v533_v20  ;;  %v1698_v35 = vld [vmem:[%s3110_s9] sm:$0xff]  ;;  %p2392_p13 = pnand %p2391_p12, %p2583_p4  ;;  %p2399_p3 = por %p2398_p2, %p2397_p1 }
  0x28   : > { %2240 = vmatprep.subr.bf16.mxu0 %v2239_v0  ;;  %2063 = vmatmul.mubr.msk.f32.vlgmr.msra.gmra.mrb[2].mxu1 %vm539_vm0, %v500_v58 }
  0x29   : > { %2246 = vmatpush1.bf16.msra.mxu1 %v2245_v5  ;;  %1054 = vmatprep.mubr.f32.mxu1 %v2470_v7  ;;  %p2393_p0 = pneg %p2392_p13 }
  0x2a   : > { %2248 = vmatprep.subr.bf16.mxu1 %v2247_v8 }
  0x2b   : > { %2242 = vmatpush1.bf16.msra.mxu0 %v2241_v6  ;;  %p2400_p5 = pnand %p2399_p3, %p2393_p0 }
  0x2c   : > { %2163 = vmatprep.subr.mxu0 %v2470_v7 }
  0x2d   : > { %2250 = vmatpush1.bf16.msra.mxu1 %v2249_v11 }
  0x2e   : > { %2064 = vmatmul.mubr.msk.f32.vlgmr.msra.gmra.mrb[4].mxu0 %vm539_vm0, %v2768_v12  ;;  %2168 = vmatprep.subr.mxu1 %v2470_v7 }
  0x2f   : > { %2165 = vmatprep.mubr.msk.f32.mxu0 %vm2471_vm1, %v2470_v7 }
  0x30   : > { %2065 = vmatmul.mubr.msk.f32.vlgmr.msra.gmra.mrb[4].mxu1 %vm539_vm0, %v2768_v12 }
  0x31   : > { %2170 = vmatprep.mubr.msk.f32.mxu1 %vm2471_vm1, %v2470_v7 }
  0xf1   : > { %v609_v25 = vpop.f32.mrb[0].mxu0  ;;  %v680_v28 = vpop.f32.mrb[0].mxu1 }
  0xf2   : > { %v610_v26 = vadd.f32 %v609_v25, %v522_v24  ;;  %v611_v27 = vpop.f32.mrb[1].mxu0  ;;  %v682_v29 = vpop.f32.mrb[1].mxu1  ;;  %v681_v52 = vadd.f32 %v680_v28, %v530_v47  ;;  %v1719_v47 = vld [vmem:[%s3110_s9 + $0xa8] sm:$0xff] }
  0xf3   : > { %v612_v46 = vadd.f32 %v611_v27, %v526_v41  ;;  %v683_v56 = vadd.f32 %v682_v29, %v534_v53  ;;  %v1717_v41 = vld [vmem:[%s3110_s9 + $0x98] sm:$0xff] }
  0xf4   : > { %2164 = vmatpush3.xpose.msra.mxu0 %v610_v26  ;;  %v1721_v53 = vld [vmem:[%s3110_s9 + $0xb8] sm:$0xff] }
  0xf5   : > { %2173 = vmatprep.subr.mxu0 %v2470_v7 }
  0xf9   : > { %v792_v31 = vpop.f32.mrb[2].mxu0 }
  0xfa   : > { %v793_v32 = vadd.f32 %v792_v31, %v706_v30  ;;  %v794_v33 = vpop.f32.mrb[3].mxu0 }
  0xfb   : > { %v2787_v34 = vadd.f32 %v794_v33, %v710_v17  ;;  %v863_v36 = vpop.f32.mrb[2].mxu1  ;;  %v1715_v33 = vld [vmem:[%s3110_s9 + $0x88] sm:$0xff] }
  0xfc   : > { %2169 = vmatpush3.msra.mxu1 %v793_v32  ;;  %v2792_v37 = vadd.f32 %v863_v36, %v714_v19  ;;  %v865_v38 = vpop.f32.mrb[3].mxu1  ;;  %v1714_v32 = vld [vmem:[%s3110_s9 + $0x80] sm:$0xff] }
  0xfd   : > { %2178 = vmatprep.subr.mxu1 %v2470_v7  ;;  %v2795_v40 = vadd.f32 %v865_v38, %v718_v21  ;;  %v2251_v36 = vpack.c.bf16 %v1715_v33, %v1714_v32  ;;  %v1699_v38 = vld [vmem:[%s3110_s9 + $0x8] sm:$0xff] }
 0x101   : > { %v985_v42 = vpop.f32.mrb[4].mxu0 }
 0x102   : > { %v986_v43 = vadd.f32 %v985_v42, %v898_v39  ;;  %v987_v45 = vpop.f32.mrb[5].mxu0  ;;  %v1716_v39 = vld [vmem:[%s3110_s9 + $0x90] sm:$0xff]  ;;  %v2253_v42 = vpack.c.bf16 %v1699_v38, %v1698_v35  ;;  %v1733_v38 = vld [vmem:[%s3110_s9 + $0x118] sm:$0xff] }
 0x103   : > { %v1056_v49 = vpop.f32.mrb[4].mxu1  ;;  %v988_v51 = vadd.f32 %v987_v45, %v902_v44  ;;  %v1700_v44 = vld [vmem:[%s3110_s9 + $0x10] sm:$0xff]  ;;  %v1701_v45 = vld [vmem:[%s3110_s9 + $0x18] sm:$0xff] }
 0x104   : > { %2166 = vmatmul.mubr.f32.vlgmr.msra.gmra.mrb[6].mxu0 %v986_v43  ;;  %v1058_v50 = vpop.f32.mrb[5].mxu1  ;;  %v1057_v54 = vadd.f32 %v1056_v49, %v906_v48  ;;  %v2255_v43 = vpack.c.bf16 %v1717_v41, %v1716_v39  ;;  %v2257_v48 = vpack.c.bf16 %v1701_v45, %v1700_v44  ;;  %v1734_v41 = vld [vmem:[%s3110_s9 + $0x120] sm:$0xff]  ;;  %v1753_v44 = vld [vmem:[%s3110_s9 + $0x1b8] sm:$0xff] }
 0x105   : > { %2174 = vmatpush3.xpose.msra.mxu0 %v612_v46  ;;  %2175 = vmatprep.mubr.msk.f32.mxu0 %vm2471_vm1, %v2470_v7  ;;  %v1059_v57 = vadd.f32 %v1058_v50, %v910_v55  ;;  %v1718_v46 = vld [vmem:[%s3110_s9 + $0xa0] sm:$0xff] }
 0x106   : > { %2183 = vmatprep.subr.mxu0 %v2470_v7  ;;  %v2259_v49 = vpack.c.bf16 %v1719_v47, %v1718_v46  ;;  %v1702_v50 = vld [vmem:[%s3110_s9 + $0x20] sm:$0xff]  ;;  %v1736_v47 = vld [vmem:[%s3110_s9 + $0x130] sm:$0xff] }
 0x108   : > { %2176 = vmatmul.mubr.f32.vlgmr.msra.gmra.mrb[8].mxu0 %v988_v51  ;;  %v1703_v51 = vld [vmem:[%s3110_s9 + $0x28] sm:$0xff] }
 0x109   : > { %2184 = vmatpush3.xpose.msra.mxu0 %v681_v52  ;;  %2185 = vmatprep.mubr.msk.f32.mxu0 %vm2471_vm1, %v2470_v7  ;;  %v1720_v52 = vld [vmem:[%s3110_s9 + $0xb0] sm:$0xff] }
 0x10a   : > { %2193 = vmatprep.subr.mxu0 %v2470_v7  ;;  %v2263_v55 = vpack.c.bf16 %v1721_v53, %v1720_v52  ;;  %v1738_v53 = vld [vmem:[%s3110_s9 + $0x140] sm:$0xff] }
 0x10c   : > { %2186 = vmatmul.mubr.f32.vlgmr.msra.gmra.mrb[10].mxu0 %v1057_v54  ;;  %v2261_v54 = vpack.c.bf16 %v1703_v51, %v1702_v50  ;;  %v1755_v50 = vld [vmem:[%s3110_s9 + $0x1c8] sm:$0xff] }
 0x10d   : > { %2194 = vmatpush3.xpose.msra.mxu0 %v683_v56  ;;  %2195 = vmatprep.mubr.msk.f32.mxu0 %vm2471_vm1, %v2470_v7  ;;  %v1704_v56 = vld [vmem:[%s3110_s9 + $0x30] sm:$0xff] }
 0x10e   : > { %2252 = vmatprep.subr.bf16.mxu0 %v2251_v36  ;;  %v1732_v36 = vld [vmem:[%s3110_s9 + $0x110] sm:$0xff] }
 0x110   : > { %2196 = vmatmul.mubr.f32.vlgmr.msra.gmra.mrb[12].mxu0 %v1059_v57  ;;  %v1705_v57 = vld [vmem:[%s3110_s9 + $0x38] sm:$0xff] }
 0x111   : > { %2254 = vmatpush3.bf16.msra.mxu0 %v2253_v42  ;;  %v1735_v42 = vld [vmem:[%s3110_s9 + $0x128] sm:$0xff] }
 0x112   : > { %2256 = vmatprep.subr.bf16.mxu0 %v2255_v43  ;;  %v1752_v43 = vld [vmem:[%s3110_s9 + $0x1b0] sm:$0xff]  ;;  %v2293_v45 = vpack.c.bf16 %v1735_v42, %v1734_v41 }
 0x113   : > { %v2295_v46 = vpack.c.bf16 %v1753_v44, %v1752_v43 }
 0x115   : > { %2258 = vmatpush3.bf16.msra.mxu0 %v2257_v48  ;;  %v1737_v48 = vld [vmem:[%s3110_s9 + $0x138] sm:$0xff] }
 0x116   : > { %2260 = vmatprep.subr.bf16.mxu0 %v2259_v49  ;;  %v1754_v49 = vld [vmem:[%s3110_s9 + $0x1c0] sm:$0xff]  ;;  %v2297_v51 = vpack.c.bf16 %v1737_v48, %v1736_v47 }
 0x117   : > { %v2299_v52 = vpack.c.bf16 %v1755_v50, %v1754_v49 }
 0x119   : > { %2262 = vmatpush3.bf16.msra.mxu0 %v2261_v54  ;;  %v1739_v54 = vld [vmem:[%s3110_s9 + $0x148] sm:$0xff] }
 0x11a   : > { %2264 = vmatprep.subr.bf16.mxu0 %v2263_v55  ;;  %v2301_v55 = vpack.c.bf16 %v1739_v54, %v1738_v53 }
 0x1d7   : > { %v1128_v58 = vpop.f32.mrb[6].mxu0 }
 0x1d8   : > { %v1132_v59 = vmul.f32 0.35355338, %v1128_v58  ;;  %v2167_v60 = vpop.f32.mrb[7].mxu0  ;;  %v1722_v58 = vld [vmem:[%s3110_s9 + $0xc0] sm:$0xff] }
 0x1d9   : > { %v2265_v60 = vpack.c.bf16 %v1705_v57, %v1704_v56  ;;  %v1728_v56 = vld [vmem:[%s3110_s9 + $0xf0] sm:$0xff]  ;;  %v1729_v57 = vld [vmem:[%s3110_s9 + $0xf8] sm:$0xff] }
 0x1da   : > { %v1134_v61 = vsel %vm1133_vm2, %v1132_v59, -inf }
 0x1db   : > { %1135 = vmax.xlane.f32.xlu0 %v1134_v61  ;;  %v1287_v62 = vpop.f32.mrb[8].mxu0  ;;  %2266 = vmatpush3.bf16.msra.mxu0 %v2265_v60  ;;  %v1757_v60 = vld [vmem:[%s3110_s9 + $0x1d8] sm:$0xff] }
 0x1dc   : > { %v1291_v63 = vmul.f32 0.35355338, %v1287_v62  ;;  %v2177_v0 = vpop.f32.mrb[9].mxu0  ;;  %v1706_v62 = vld [vmem:[%s3110_s9 + $0x40] sm:$0xff] }
 0x1dd   : > { %v1724_v0 = vld [vmem:[%s3110_s9 + $0xd0] sm:$0xff] }
 0x1de   : > { %v1292_v1 = vsel %vm1133_vm2, %v1291_v63, -inf }
 0x1df   : > { %1293 = vmax.xlane.f32.xlu0 %v1292_v1  ;;  %v1445_v2 = vpop.f32.mrb[10].mxu0  ;;  %v1725_v1 = vld [vmem:[%s3110_s9 + $0xd8] sm:$0xff] }
 0x1e0   : > { %v1449_v3 = vmul.f32 0.35355338, %v1445_v2  ;;  %v2187_v4 = vpop.f32.mrb[11].mxu0 }
 0x1e1   : > { %v1708_v4 = vld [vmem:[%s3110_s9 + $0x50] sm:$0xff] }
 0x1e2   : > { %v1450_v5 = vsel %vm1133_vm2, %v1449_v3, -inf }
 0x1e3   : > { %1451 = vmax.xlane.f32.xlu1 %v1450_v5  ;;  %v1603_v6 = vpop.f32.mrb[12].mxu0  ;;  %v1709_v5 = vld [vmem:[%s3110_s9 + $0x58] sm:$0xff] }
 0x1e4   : > { %v1607_v8 = vmul.f32 0.35355338, %v1603_v6  ;;  %v2197_v9 = vpop.f32.mrb[13].mxu0  ;;  %v1726_v6 = vld [vmem:[%s3110_s9 + $0xe0] sm:$0xff] }
 0x1e5   : > { %v2273_v9 = vpack.c.bf16 %v1709_v5, %v1708_v4  ;;  %v1758_v4 = vld [vmem:[%s3110_s9 + $0x1e0] sm:$0xff]  ;;  %v1759_v5 = vld [vmem:[%s3110_s9 + $0x1e8] sm:$0xff] }
 0x1e6   : > { %v1608_v10 = vsel %vm1133_vm2, %v1607_v8, -inf }
 0x1e7   : > { %1609 = vmax.xlane.f32.xlu1 %v1608_v10 }
 0x268   : > { %v1136_v11 = vpop.xlane.xlu0 %1135 }
 0x269   : > { %v1137_v13 = vsub.f32 %v1132_v59, %v1136_v11  ;;  %v1723_v59 = vld [vmem:[%s3110_s9 + $0xc8] sm:$0xff]  ;;  %v1710_v11 = vld [vmem:[%s3110_s9 + $0x60] sm:$0xff] }
 0x26a   : > { %v2267_v61 = vpack.c.bf16 %v1723_v59, %v1722_v58  ;;  %v1756_v58 = vld [vmem:[%s3110_s9 + $0x1d0] sm:$0xff]  ;;  %v2279_v59 = vpack.c.bf16 %v1729_v57, %v1728_v56 }
 0x26b   : > { %v1138_v14 = vmul.f32 1.442695, %v1137_v13  ;;  %v1711_v13 = vld [vmem:[%s3110_s9 + $0x68] sm:$0xff] }
 0x26c   : > { %v1294_v15 = vpop.xlane.xlu0 %1293  ;;  %2268 = vmatprep.subr.bf16.mxu0 %v2267_v61  ;;  %v1712_v61 = vld [vmem:[%s3110_s9 + $0x70] sm:$0xff] }
 0x26d   : > { %2372 = vpow2.f32 %v1138_v14  ;;  %v1295_v16 = vsub.f32 %v1291_v63, %v1294_v15  ;;  %v1707_v63 = vld [vmem:[%s3110_s9 + $0x48] sm:$0xff]  ;;  %v2277_v14 = vpack.c.bf16 %v1711_v13, %v1710_v11  ;;  %v1760_v11 = vld [vmem:[%s3110_s9 + $0x1f0] sm:$0xff]  ;;  %v1761_v13 = vld [vmem:[%s3110_s9 + $0x1f8] sm:$0xff] }
 0x26e   : > { %v2269_v2 = vpack.c.bf16 %v1707_v63, %v1706_v62  ;;  %v1713_v62 = vld [vmem:[%s3110_s9 + $0x78] sm:$0xff]  ;;  %v2303_v63 = vpack.c.bf16 %v1757_v60, %v1756_v58 }
 0x26f   : > { %v1296_v17 = vmul.f32 1.442695, %v1295_v16 }
 0x270   : > { %v1452_v18 = vpop.xlane.xlu1 %1451  ;;  %2270 = vmatpush3.bf16.msra.mxu0 %v2269_v2  ;;  %v1741_v2 = vld [vmem:[%s3110_s9 + $0x158] sm:$0xff] }
 0x271   : > { %2374 = vpow2.f32 %v1296_v17  ;;  %v1453_v19 = vsub.f32 %v1449_v3, %v1452_v18  ;;  %v2271_v3 = vpack.c.bf16 %v1725_v1, %v1724_v0  ;;  %v2281_v0 = vpack.c.bf16 %v1713_v62, %v1712_v61  ;;  %v1740_v1 = vld [vmem:[%s3110_s9 + $0x150] sm:$0xff] }
 0x273   : > { %v1454_v20 = vmul.f32 1.442695, %v1453_v19  ;;  %2272 = vmatprep.subr.bf16.mxu0 %v2271_v3  ;;  %v2305_v3 = vpack.c.bf16 %v1741_v2, %v1740_v1 }
 0x274   : > { %v1610_v21 = vpop.xlane.xlu1 %1609  ;;  %2274 = vmatpush3.bf16.msra.mxu0 %v2273_v9  ;;  %v1743_v9 = vld [vmem:[%s3110_s9 + $0x168] sm:$0xff] }
 0x275   : > { %2376 = vpow2.f32 %v1454_v20  ;;  %v1611_v22 = vsub.f32 %v1607_v8, %v1610_v21  ;;  %v1727_v8 = vld [vmem:[%s3110_s9 + $0xe8] sm:$0xff] }
 0x276   : > { %v2275_v10 = vpack.c.bf16 %v1727_v8, %v1726_v6  ;;  %v2307_v6 = vpack.c.bf16 %v1759_v5, %v1758_v4  ;;  %v1742_v8 = vld [vmem:[%s3110_s9 + $0x160] sm:$0xff] }
 0x277   : > { %v2809_v23 = vpop.eup %2372  ;;  %v1612_v24 = vmul.f32 1.442695, %v1611_v22 }
 0x278   : > { %v1140_v25 = vsel %vm1133_vm2, %v2809_v23, 0.0  ;;  %2276 = vmatprep.subr.bf16.mxu0 %v2275_v10  ;;  %v2309_v10 = vpack.c.bf16 %v1743_v9, %v1742_v8 }
 0x279   : > { %2378 = vpow2.f32 %v1612_v24  ;;  %1141 = vadd.xlane.f32.xlu0 %v1140_v25  ;;  %2278 = vmatpush3.bf16.msra.mxu0 %v2277_v14  ;;  %v1746_v24 = vld [vmem:[%s3110_s9 + $0x180] sm:$0xff]  ;;  %v2311_v14 = vpack.c.bf16 %v1761_v13, %v1760_v11 }
 0x27a   : > { %2280 = vmatprep.subr.bf16.mxu0 %v2279_v59 }
 0x27b   : > { %v2813_v26 = vpop.eup %2374 }
 0x27c   : > { %v1298_v27 = vsel %vm1133_vm2, %v2813_v26, 0.0 }
 0x27d   : > { %1299 = vadd.xlane.f32.xlu1 %v1298_v27  ;;  %v1730_v27 = vld [vmem:[%s3110_s9 + $0x100] sm:$0xff]  ;;  %2282 = vmatpush3.bf16.msra.mxu0 %v2281_v0 }
 0x27f   : > { %v2817_v28 = vpop.eup %2376 }
 0x280   : > { %v1456_v29 = vsel %vm1133_vm2, %v2817_v28, 0.0 }
 0x281   : > { %1457 = vadd.xlane.f32.xlu0 %v1456_v29  ;;  %v1731_v29 = vld [vmem:[%s3110_s9 + $0x108] sm:$0xff] }
 0x282   : > { %v2285_v32 = vpack.c.bf16 %v1731_v29, %v1730_v27  ;;  %v2070_v29 = vld [vmem:[%s3111_s10] ss:$0 sm:$0xff] }
 0x283   : > { %v2821_v30 = vpop.eup %2378 }
 0x284   : > { %v1614_v31 = vsel %vm1133_vm2, %v2821_v30, 0.0 }
 0x285   : > { %1615 = vadd.xlane.f32.xlu1 %v1614_v31  ;;  %v1749_v31 = vld [vmem:[%s3110_s9 + $0x198] sm:$0xff] }
 0x306   : > { %v1142_v15 = vpop.xlane.xlu0 %1141 }
 0x307   : > { %2380 = vrcp.f32 %v1142_v15  ;;  %v1744_v15 = vld [vmem:[%s3110_s9 + $0x170] sm:$0xff] }
 0x30a   : > { %v1300_v16 = vpop.xlane.xlu1 %1299 }
 0x30b   : > { %2382 = vrcp.f32 %v1300_v16  ;;  %v1745_v16 = vld [vmem:[%s3110_s9 + $0x178] sm:$0xff] }
 0x30e   : > { %v1458_v17 = vpop.xlane.xlu0 %1457 }
 0x30f   : > { %2384 = vrcp.f32 %v1458_v17  ;;  %v2313_v17 = vpack.c.bf16 %v1745_v16, %v1744_v15 }
 0x311   : > { %v2381_v18 = vpop.eup %2380 }
 0x312   : > { %v1144_v19 = vmul.f32 %v2381_v18, %v2809_v23  ;;  %v1616_v20 = vpop.xlane.xlu1 %1615  ;;  %v1747_v23 = vld [vmem:[%s3110_s9 + $0x188] sm:$0xff] }
 0x313   : > { %2386 = vrcp.f32 %v1616_v20 }
 0x314   : > { %2171 = vmatmul.mubr.msk.f32.vlgmr.msra.gmra.mrb[6].mxu1 %vm1133_vm2, %v1144_v19 }
 0x315   : > { %v2383_v21 = vpop.eup %2382  ;;  %2179 = vmatpush3.msra.mxu1 %v2787_v34  ;;  %2180 = vmatprep.mubr.msk.f32.mxu1 %vm2471_vm1, %v2470_v7 }
 0x316   : > { %v1302_v22 = vmul.f32 %v2383_v21, %v2813_v26  ;;  %2188 = vmatprep.subr.mxu1 %v2470_v7  ;;  %v2283_v26 = vpack.c.bf16 %v1747_v23, %v1746_v24 }
 0x318   : > { %2181 = vmatmul.mubr.msk.f32.vlgmr.msra.gmra.mrb[8].mxu1 %vm1133_vm2, %v1302_v22 }
 0x319   : > { %v2385_v25 = vpop.eup %2384  ;;  %2189 = vmatpush3.msra.mxu1 %v2792_v37  ;;  %2190 = vmatprep.mubr.msk.f32.mxu1 %vm2471_vm1, %v2470_v7  ;;  %v1748_v37 = vld [vmem:[%s3110_s9 + $0x190] sm:$0xff] }
 0x31a   : > { %v1460_v34 = vmul.f32 %v2385_v25, %v2817_v28  ;;  %2198 = vmatprep.subr.mxu1 %v2470_v7  ;;  %v2287_v35 = vpack.c.bf16 %v1749_v31, %v1748_v37 }
 0x31c   : > { %2191 = vmatmul.mubr.msk.f32.vlgmr.msra.gmra.mrb[10].mxu1 %vm1133_vm2, %v1460_v34 }
 0x31d   : > { %v2387_v28 = vpop.eup %2386  ;;  %2199 = vmatpush3.msra.mxu1 %v2795_v40  ;;  %2200 = vmatprep.mubr.msk.f32.mxu1 %vm2471_vm1, %v2470_v7  ;;  %v1750_v40 = vld [vmem:[%s3110_s9 + $0x1a0] sm:$0xff]  ;;  %v1751_v7 = vld [vmem:[%s3110_s9 + $0x1a8] sm:$0xff] }
 0x31e   : > { %v1618_v33 = vmul.f32 %v2387_v28, %v2821_v30  ;;  %2284 = vmatprep.subr.bf16.mxu1 %v2283_v26  ;;  %v2289_v30 = vpack.c.bf16 %v1733_v38, %v1732_v36  ;;  %v2291_v39 = vpack.c.bf16 %v1751_v7, %v1750_v40 }
 0x320   : > { %2201 = vmatmul.mubr.msk.f32.vlgmr.msra.gmra.mrb[12].mxu1 %vm1133_vm2, %v1618_v33 }
 0x321   : > { %2286 = vmatpush3.bf16.msra.mxu1 %v2285_v32 }
 0x322   : > { %2288 = vmatprep.subr.bf16.mxu1 %v2287_v35 }
 0x325   : > { %2290 = vmatpush3.bf16.msra.mxu1 %v2289_v30 }
 0x326   : > { %2292 = vmatprep.subr.bf16.mxu1 %v2291_v39 }
 0x329   : > { %2294 = vmatpush3.bf16.msra.mxu1 %v2293_v45 }
 0x32a   : > { %2296 = vmatprep.subr.bf16.mxu1 %v2295_v46  ;;  %v2072_v46 = vld [vmem:[%s3113_s12] ss:$0 sm:$0xff] }
 0x32d   : > { %2298 = vmatpush3.bf16.msra.mxu1 %v2297_v51 }
 0x32e   : > { %2300 = vmatprep.subr.bf16.mxu1 %v2299_v52 }
 0x331   : > { %2302 = vmatpush3.bf16.msra.mxu1 %v2301_v55 }
 0x332   : > { %2304 = vmatprep.subr.bf16.mxu1 %v2303_v63 }
 0x335   : > { %2306 = vmatpush3.bf16.msra.mxu1 %v2305_v3 }
 0x336   : > { %2308 = vmatprep.subr.bf16.mxu1 %v2307_v6 }
 0x339   : > { %2310 = vmatpush3.bf16.msra.mxu1 %v2309_v10 }
 0x33a   : > { %2312 = vmatprep.subr.bf16.mxu1 %v2311_v14 }
 0x33d   : > { %2314 = vmatpush3.bf16.msra.mxu1 %v2313_v17 }
 0x3e7   : > { %v1215_v18 = vpop.f32.mrb[6].mxu1 }
 0x3e8   : > { %v2172_v19 = vpop.f32.mrb[7].mxu1 }
 0x3eb   : > { %v1373_v20 = vpop.f32.mrb[8].mxu1 }
 0x3ec   : > { %v2182_v21 = vpop.f32.mrb[9].mxu1  ;;  %1833 = vmatprep.mubr.f32.mxu0 %v1373_v20 }
 0x3ed   : > { %1834 = vmatmul.mubr.f32.vlgmr.msra.gmra.mrb[14].mxu0 %v1215_v18 }
 0x3ef   : > { %v1531_v22 = vpop.f32.mrb[10].mxu1 }
 0x3f0   : > { %v2192_v24 = vpop.f32.mrb[11].mxu1 }
 0x3f3   : > { %v1689_v23 = vpop.f32.mrb[12].mxu1 }
 0x3f4   : > { %v2202_v25 = vpop.f32.mrb[13].mxu1  ;;  %1903 = vmatprep.mubr.f32.mxu1 %v1689_v23 }
 0x3f5   : > { %1904 = vmatmul.mubr.f32.vlgmr.msra.gmra.mrb[14].mxu1 %v1531_v22 }
 0x4c0   : > { %v2125_v34 = vpop.f32.mrb[14].mxu0 }
 0x4c1   : > { %v2126_v26 = vpop.f32.mrb[15].mxu0 }
 0x4c2   : > { %v2127_v27 = vadd.f32 %v2126_v26, %v2125_v34 }
 0x4c4   : > { %v1836_v28 = vadd.f32 %v2127_v27, %v2070_v29 }
 0x4c8   : > { %v2160_v37 = vpop.f32.mrb[14].mxu1 }
 0x4c9   : > { %v2161_v31 = vpop.f32.mrb[15].mxu1 }
 0x4ca   : > { %v2162_v32 = vadd.f32 %v2161_v31, %v2160_v37 }
 0x4cc   : > { %v1906_v33 = vadd.f32 %v2162_v32, %v1836_v28 }
 0x4ce   : > { %v1909_v35 = vadd.f32 %v1906_v33, %v2768_v12  ;;  %v2071_v12 = vld [vmem:[%s3112_s11] ss:$0 sm:$0xff] }
 0x4d0   : > { %v1910_v36 = vsel %vm539_vm0, %v1909_v35, 0.0 }
 0x4d1   : > { %1911 = vadd.xlane.f32.xlu0 %v1910_v36 }
 0x55e   : > { %v1912_v38 = vpop.xlane.xlu0 %1911 }
 0x55f   : > { %v1914_v40 = vmul.f32 0.03125, %v1912_v38 }
 0x561   : > { %v1915_v7 = vsub.f32 %v1909_v35, %v1914_v40 }
 0x563   : > { %v1916_v30 = vmul.f32 %v1915_v7, %v1915_v7 }
 0x565   : > { %v1917_v39 = vsel %vm539_vm0, %v1916_v30, 0.0 }
 0x566   : > { %1918 = vadd.xlane.f32.xlu1 %v1917_v39 }
 0x5f3   : > { %v1919_v41 = vpop.xlane.xlu1 %1918 }
 0x5f4   : > { %v1920_v42 = vmul.f32 0.03125, %v1919_v41 }
 0x5f6   : > { %v1921_v43 = vadd.f32 1e-05, %v1920_v42 }
 0x5f8   : > { %2388 = vrsqrt.f32 %v1921_v43 }
 0x602   : > { %v2389_v44 = vpop.eup %2388 }
 0x603   : > { %v1923_v45 = vmul.f32 %v2389_v44, %v1915_v7 }
 0x605   : > { %v1931_v47 = vmul.f32 %v2071_v12, %v1923_v45 }
 0x607   : > { %v1939_v48 = vadd.f32 %v2072_v46, %v1931_v47 }
 0x609   : > { %1940 = vst.msk [vmem:[%s479_s19] sm:$0xff] %vm539_vm0, %v1939_v48 }
 0x60a   : > { %2403 = shalt.err (!%p2400_p5)
}
 0x60b   : > { %s2404_s20 = scalar_lea.hbm %s3053_s24, 128  ;;  %s2408_s19 = scalar_lea.hbm %s3114_s13, 256 }
 0x60c   : > { %p2405_p6 = scmp.ne.s32.totalorder %s3053_s24, %s2404_s20  ;;  %p2409_p10 = scmp.lt.u32.totalorder %s3053_s24, %s3114_s13 }
 0x60d   : > { %p2410_p11 = scmp.lt.u32.totalorder %s2408_s19, %s2404_s20  ;;  %p2412_p13 = scmp.lt.u32.totalorder %s2404_s20, %s3053_s24 }
 0x60e   : > { %p2406_p7 = pnand %p2405_p6, %p2583_p4 }
 0x60f   : > { %p2411_p12 = por %p2410_p11, %p2409_p10 }
 0x610   : > { %p2407_p9 = pneg %p2406_p7 }
 0x611   : > { %p2413_p0 = por %p2412_p13, %p2411_p12 }
 0x613   : > { %p2414_p1 = pnand %p2413_p0, %p2407_p9 }
 0x615   : > { %2417 = shalt.err (!%p2414_p1)
}
 0x616   : > { %2315 = dma.vmem_to_hbm [thread:$0]  (%p2583_p4), %s3055_s16, 128, %s3053_s24, %s1942_s15  }
 0x617 PF: > { %p2321_p2 = scmp.ge.s32.totalorder %s2468_s30, 2  ;;  %s1968_s28 = sand.u32 1, %s2448_s25  }
 0x618   : > { %s1969_s14 = scalar_lea.sflag [#allocation6], %s1968_s28 }
 0x619   : > { %p2318_p3 = pnand %p2321_p2, %p2590_p8 }
 0x61b   : > { %2443 = dma.done.wait (!%p2318_p3), %s1969_s14, 128  }
 0x61c   : > { %2445 = vsyncadd (!%p2318_p3), %s1969_s14, 4294967168  ;;  %s26_s30 = sadd.s32 1, %s2468_s30   ;;  %s3127_s17 = sld [smem:[#allocation8_spill]] }
 0x61d   : > { %p23_p5 = scmp.ge.s32.totalorder %s26_s30, 4   ;;  %s3128_s27 = sld [smem:[#allocation12_spill]] }
 0x61e   : > { %s3129_s28 = sld [smem:[#allocation9_spill]]  ;;  %s3130_s29 = sld [smem:[#allocation10_spill]] }
 0x61f   : > { %s3131_s25 = smov %s2452_s26  ;;  %25 = sbr.rel (!%p23_p5) target bundleno = 4 (0x4), region = 117 }
 0x622   : > { %s3132_s26 = smov %s3127_s17 }
 0x626   :  { %1974 = vsyncpa [#allocation6], 1 }
 0x627   :  { %1976 = vsyncpa [#allocation6 + $0x1], 1 }

</bundles_post_ra>
